<compile_context>
chip_gen: v5e
topology: v5e:2x2
jax: 0.10.0
libtpu: 0.0.40
codegen_flags: <defaults>
</compile_context>

<pallas_src>
import functools
import random

import jax
import jax.numpy as jnp
from jax.experimental import pallas as pl
from jax.experimental.pallas import tpu as pltpu

LANE = 128          # vreg lane width; feature dims padded to this
MAX_BATCH_TILE = 512  # per perf review: 512-row tiles hit ~85% of HBM roofline vs 29% at 128


def _round_up(x: int, m: int) -> int:
    return ((x + m - 1) // m) * m


# ---------------------------------------------------------------------------
# Fused kernel: y = L3( relu(L2(...))^n_mid ( relu(L1(x)) ) )
# All operands are single VMEM tiles; `h` lives in values/vregs between layers.
# ---------------------------------------------------------------------------
def _fused_kernel(x_ref, w1_ref, b1_ref, w2_ref, b2_ref, w3_ref, b3_ref, o_ref,
                  *, n_mid: int, compute_dtype):
    h = jnp.dot(x_ref[...], w1_ref[...], preferred_element_type=jnp.float32)
    h = jnp.maximum(h + b1_ref[...], 0.0)                       # L1 + clamp(min=0)
    if n_mid > 0:
        # Hoist loop-invariant loads + bias broadcast out of the unrolled loop.
        w2 = w2_ref[...]
        b2 = jnp.broadcast_to(b2_ref[...], h.shape)
        for _ in range(n_mid):                                  # Python-static unroll
            h = jnp.dot(h.astype(compute_dtype), w2,
                        preferred_element_type=jnp.float32)
            h = jnp.maximum(h + b2, 0.0)                        # L2 + clamp(min=0)
    y = jnp.dot(h.astype(compute_dtype), w3_ref[...],
                preferred_element_type=jnp.float32) + b3_ref[...]
    o_ref[...] = y.astype(o_ref.dtype)                          # lane-dense (padded) store


@functools.lru_cache(maxsize=None)
def _build_fused_call(n_mid: int, nb: int, tb: int, d_in: int, hp: int, op: int,
                      compute_dtype_name: str):
    """Build (and cache) the fused pallas_call for a given shape / n_mid / dtype."""
    cdt = jnp.dtype(compute_dtype_name)
    n = nb * tb
    kernel = functools.partial(_fused_kernel, n_mid=n_mid, compute_dtype=cdt)

    # --- VMEM budget (v7x: 64 MiB physical / 32 MiB default scoped; v5e/v6e: 128 MiB) ---
    w_bytes = (d_in * hp + hp * hp + hp * op) * cdt.itemsize + (hp + hp + op) * 4
    io_bytes = tb * d_in * cdt.itemsize + tb * op * 4
    vmem_est = 2 * (w_bytes + io_bytes)          # conservative: everything double-buffered
    if vmem_est > 56 * 1024 * 1024:
        # TODO(synk): add a K-tiled (contraction-gridded, "arbitrary" axis) weight path
        # so very large H still fits v7x's 64 MiB VMEM.
        raise NotImplementedError(
            "weights no longer fit resident in VMEM; K-tiled path not implemented")
    # Single-buffer the grid-invariant weight/bias blocks once they are big enough to
    # matter (halves their footprint on v7x); keep defaults at tiny sizes.
    wt_kwargs = {"pipeline_mode": pl.Buffered(1)} if w_bytes > (8 << 20) else {}
    extra_params = {}
    if vmem_est > 12 * 1024 * 1024:
        extra_params["vmem_limit_bytes"] = min(vmem_est + (8 << 20), 56 << 20)

    flops = 2 * n * (d_in * hp + n_mid * hp * hp + hp * op)
    bytes_accessed = (n * d_in * cdt.itemsize + w_bytes + n * op * 4)

    return pl.pallas_call(
        kernel,
        out_shape=jax.ShapeDtypeStruct((n, op), jnp.float32),
        grid=(nb,),
        in_specs=[
            pl.BlockSpec((tb, d_in), lambda i: (i, 0)),                 # x tile (batch-gridded)
            pl.BlockSpec((d_in, hp), lambda i: (0, 0), **wt_kwargs),    # W1 (in, H_pad), resident
            pl.BlockSpec((1, hp),    lambda i: (0, 0), **wt_kwargs),    # b1
            pl.BlockSpec((hp, hp),   lambda i: (0, 0), **wt_kwargs),    # W2
            pl.BlockSpec((1, hp),    lambda i: (0, 0), **wt_kwargs),    # b2
            pl.BlockSpec((hp, op),   lambda i: (0, 0), **wt_kwargs),    # W3
            pl.BlockSpec((1, op),    lambda i: (0, 0), **wt_kwargs),    # b3
        ],
        out_specs=pl.BlockSpec((tb, op), lambda i: (i, 0)),
        compiler_params=pltpu.CompilerParams(
            dimension_semantics=("parallel",),   # megacore-shardable batch axis (v7x)
            **extra_params),
        cost_estimate=pl.CostEstimate(
            flops=flops, transcendentals=0, bytes_accessed=bytes_accessed),
    )


# ---------------------------------------------------------------------------
# Parameter init (PyTorch-style) and one-time packing (transpose + lane padding).
# ---------------------------------------------------------------------------
def init_linear_params(key, d_in, d_out):
    """U(-1/sqrt(fan_in), 1/sqrt(fan_in)), PyTorch (out, in) layout."""
    kw, kb = jax.random.split(key)
    bound = 1.0 / jnp.sqrt(jnp.float32(d_in))
    w = jax.random.uniform(kw, (d_out, d_in), jnp.float32, -bound, bound)
    b = jax.random.uniform(kb, (d_out,), jnp.float32, -bound, bound)
    return w, b


def pack_params(params, d_in, h, d_out, use_bf16=False):
    """One-time: transpose to (in, out) and zero-pad feature dims to 128 lanes.

    Zero padding keeps padded hidden lanes exactly 0 through ReLU, and zero rows of the
    next weight guarantee they contribute nothing — results match unpadded math.
    `use_bf16=True` stores weights in bf16 (native MXU rate on v6e/v7x); biases stay f32
    and accumulation stays f32.
    """
    hp = _round_up(max(h, LANE), LANE)
    op = _round_up(max(d_out, LANE), LANE)
    wdt = jnp.bfloat16 if use_bf16 else jnp.float32
    (w1, b1), (w2, b2), (w3, b3) = params

    def pad_wt(w, rows, cols):          # w is (out, in) -> packed (rows, cols)
        wt = w.T                        # (in, out)
        full = jnp.zeros((rows, cols), jnp.float32).at[:wt.shape[0], :wt.shape[1]].set(wt)
        return full.astype(wdt)

    def pad_b(b, cols):
        return jnp.zeros((1, cols), jnp.float32).at[0, :b.shape[0]].set(b)

    # NOTE: d_in is left unpadded (K=32 underfills the MXU slightly, but padding x per
    # forward would cost more than it saves at these sizes — per perf review).
    return {
        "w1": pad_wt(w1, d_in, hp), "b1": pad_b(b1, hp),
        "w2": pad_wt(w2, hp, hp),   "b2": pad_b(b2, hp),
        "w3": pad_wt(w3, hp, op),   "b3": pad_b(b3, op),
        "hp": hp, "op": op, "d_out": d_out,
        "compute_dtype": str(jnp.dtype(wdt)),
    }


# ---------------------------------------------------------------------------
# Forward pass: one jitted executable = (optional batch pad) + fused pallas_call
# + (optional) output slice. `return_padded=True` skips the slice on the latency path.
# ---------------------------------------------------------------------------
@functools.lru_cache(maxsize=None)
def _jitted_forward(n_mid, n, d_in, hp, op, d_out, compute_dtype_name, return_padded):
    tb = n if n <= MAX_BATCH_TILE else MAX_BATCH_TILE
    n_pad = _round_up(n, tb)
    nb = n_pad // tb
    call = _build_fused_call(n_mid, nb, tb, d_in, hp, op, compute_dtype_name)
    cdt = jnp.dtype(compute_dtype_name)

    def fwd(x, w1, b1, w2, b2, w3, b3):
        xc = x.astype(cdt)
        if n_pad != n:                       # arbitrary batch sizes: zero-pad rows
            xc = jnp.pad(xc, ((0, n_pad - n), (0, 0)))
        y_pad = call(xc, w1, b1, w2, b2, w3, b3)
        if return_padded:
            return y_pad[:n] if n_pad != n else y_pad
        return y_pad[:n, :d_out]

    return jax.jit(fwd)


def dynamic_net_forward(x, packed, n_mid: int, return_padded: bool = False):
    n, d_in = x.shape
    fwd = _jitted_forward(n_mid, n, d_in, packed["hp"], packed["op"], packed["d_out"],
                          packed["compute_dtype"], return_padded)
    return fwd(x, packed["w1"], packed["b1"],
               packed["w2"], packed["b2"],
               packed["w3"], packed["b3"])


if __name__ == "__main__":
    # Shapes implied by the module: x is (N, D_in); hidden H; output D_out.
    N, D_in, H, D_out = 8, 32, 32, 16

    key = jax.random.PRNGKey(0)
    kx, k1, k2, k3 = jax.random.split(key, 4)

    x = jax.random.normal(kx, (N, D_in), jnp.float32)
    params = (
        init_linear_params(k1, D_in, H),   # L1
        init_linear_params(k2, H, H),      # L2 (shared across repeats, like the module)
        init_linear_params(k3, H, D_out),  # L3
    )
    packed = pack_params(params, D_in, H, D_out)   # f32 packing: exact parity with reference

    # The PyTorch module samples random.randint(0, 3) per forward call; we sample it at
    # Python level (dynamic computation graph => one cached compile per n_mid value).
    random.seed(0)
    n_mid = random.randint(0, 3)

    y = jax.block_until_ready(dynamic_net_forward(x, packed, n_mid))

    # Sanity check against a pure-JAX reference (original PyTorch-layout params).
    def ref_forward(x, params, n_mid):
        (w1, b1), (w2, b2), (w3, b3) = params
        h = jnp.maximum(x @ w1.T + b1, 0.0)
        for _ in range(n_mid):
            h = jnp.maximum(h @ w2.T + b2, 0.0)
        return h @ w3.T + b3

    y_ref = ref_forward(x, params, n_mid)
    assert y.shape == (N, D_out)
    assert jnp.allclose(y, y_ref, atol=1e-5, rtol=1e-5)

    # Exercise all dynamic-depth variants, both the sliced and padded-output (latency) paths.
    for k in range(4):
        rk = ref_forward(x, params, k)
        yk = jax.block_until_ready(dynamic_net_forward(x, packed, k))
        assert jnp.allclose(yk, rk, atol=1e-5, rtol=1e-5)
        yp = jax.block_until_ready(dynamic_net_forward(x, packed, k, return_padded=True))
        assert yp.shape == (N, packed["op"])
        assert jnp.allclose(yp[:, :D_out], rk, atol=1e-5, rtol=1e-5)
        assert jnp.allclose(yp[:, D_out:], 0.0)

    # bf16 fast path (native MXU rate on v6e/v7x); relaxed tolerance, f32 accumulation.
    packed_bf16 = pack_params(params, D_in, H, D_out, use_bf16=True)
    y16 = jax.block_until_ready(dynamic_net_forward(x, packed_bf16, n_mid))
    assert jnp.allclose(y16, y_ref, atol=5e-2, rtol=5e-2)

    print("KERNEL_OK")
</pallas_src>

<mosaic_0001>
module attributes {stable_mosaic.version = 11 : i64} {
  func.func @_fused_kernel(%arg0: i32, %arg1: memref<8x32xf32, #tpu.memory_space<vmem>>, %arg2: memref<32x128xf32, #tpu.memory_space<vmem>>, %arg3: memref<1x128xf32, #tpu.memory_space<vmem>>, %arg4: memref<128x128xf32, #tpu.memory_space<vmem>>, %arg5: memref<1x128xf32, #tpu.memory_space<vmem>>, %arg6: memref<128x128xf32, #tpu.memory_space<vmem>>, %arg7: memref<1x128xf32, #tpu.memory_space<vmem>>, %arg8: memref<8x128xf32, #tpu.memory_space<vmem>>) attributes {dimension_semantics = [#tpu.dimension_semantics<parallel>], iteration_bounds = array<i64: 1>, scalar_prefetch = 0 : i64, scratch_operands = 0 : i64, tpu.core_type = #tpu.core_type<tc>, window_params = [{transform_indices = @transform_0, window_bounds = array<i64: 8, 32>}, {pipeline_mode = #tpu.pipeline_mode<synchronous>, transform_indices = @transform_1, window_bounds = array<i64: 32, 128>}, {pipeline_mode = #tpu.pipeline_mode<synchronous>, transform_indices = @transform_2, window_bounds = array<i64: 1, 128>}, {pipeline_mode = #tpu.pipeline_mode<synchronous>, transform_indices = @transform_3, window_bounds = array<i64: 128, 128>}, {pipeline_mode = #tpu.pipeline_mode<synchronous>, transform_indices = @transform_4, window_bounds = array<i64: 1, 128>}, {pipeline_mode = #tpu.pipeline_mode<synchronous>, transform_indices = @transform_5, window_bounds = array<i64: 128, 128>}, {pipeline_mode = #tpu.pipeline_mode<synchronous>, transform_indices = @transform_6, window_bounds = array<i64: 1, 128>}, {transform_indices = @transform_7, window_bounds = array<i64: 8, 128>}]} {
    %c0 = arith.constant 0 : index
    %c0_0 = arith.constant 0 : index
    %0 = vector.load %arg1[%c0, %c0_0] : memref<8x32xf32, #tpu.memory_space<vmem>>, vector<8x32xf32>
    %c0_1 = arith.constant 0 : index
    %c0_2 = arith.constant 0 : index
    %1 = vector.load %arg2[%c0_1, %c0_2] : memref<32x128xf32, #tpu.memory_space<vmem>>, vector<32x128xf32>
    %cst = arith.constant dense<0.000000e+00> : vector<8x128xf32>
    %2 = tpu.matmul %0, %1, %cst {dimension_numbers = #tpu.dot_dimension_numbers<[1], [0], [0], [1], [0, 0, 1, 1], [], []>} : vector<8x32xf32>, vector<32x128xf32>, vector<8x128xf32> -> vector<8x128xf32>
    %c0_3 = arith.constant 0 : index
    %c0_4 = arith.constant 0 : index
    %3 = vector.load %arg3[%c0_3, %c0_4] : memref<1x128xf32, #tpu.memory_space<vmem>>, vector<1x128xf32>
    %4 = vector.broadcast %3 : vector<1x128xf32> to vector<8x128xf32>
    %5 = arith.addf %2, %4 : vector<8x128xf32>
    %cst_5 = arith.constant 0.000000e+00 : f32
    %6 = vector.broadcast %cst_5 : f32 to vector<8x128xf32>
    %7 = arith.maximumf %5, %6 : vector<8x128xf32>
    %c0_6 = arith.constant 0 : index
    %c0_7 = arith.constant 0 : index
    %8 = vector.load %arg4[%c0_6, %c0_7] : memref<128x128xf32, #tpu.memory_space<vmem>>, vector<128x128xf32>
    %c0_8 = arith.constant 0 : index
    %c0_9 = arith.constant 0 : index
    %9 = vector.load %arg5[%c0_8, %c0_9] : memref<1x128xf32, #tpu.memory_space<vmem>>, vector<1x128xf32>
    %10 = vector.shape_cast %9 : vector<1x128xf32> to vector<1x128xf32>
    %11 = vector.broadcast %10 : vector<1x128xf32> to vector<8x128xf32>
    %cst_10 = arith.constant dense<0.000000e+00> : vector<8x128xf32>
    %12 = tpu.matmul %7, %8, %cst_10 {dimension_numbers = #tpu.dot_dimension_numbers<[1], [0], [0], [1], [0, 0, 1, 1], [], []>} : vector<8x128xf32>, vector<128x128xf32>, vector<8x128xf32> -> vector<8x128xf32>
    %13 = arith.addf %12, %11 : vector<8x128xf32>
    %cst_11 = arith.constant 0.000000e+00 : f32
    %14 = vector.broadcast %cst_11 : f32 to vector<8x128xf32>
    %15 = arith.maximumf %13, %14 : vector<8x128xf32>
    %cst_12 = arith.constant dense<0.000000e+00> : vector<8x128xf32>
    %16 = tpu.matmul %15, %8, %cst_12 {dimension_numbers = #tpu.dot_dimension_numbers<[1], [0], [0], [1], [0, 0, 1, 1], [], []>} : vector<8x128xf32>, vector<128x128xf32>, vector<8x128xf32> -> vector<8x128xf32>
    %17 = arith.addf %16, %11 : vector<8x128xf32>
    %cst_13 = arith.constant 0.000000e+00 : f32
    %18 = vector.broadcast %cst_13 : f32 to vector<8x128xf32>
    %19 = arith.maximumf %17, %18 : vector<8x128xf32>
    %cst_14 = arith.constant dense<0.000000e+00> : vector<8x128xf32>
    %20 = tpu.matmul %19, %8, %cst_14 {dimension_numbers = #tpu.dot_dimension_numbers<[1], [0], [0], [1], [0, 0, 1, 1], [], []>} : vector<8x128xf32>, vector<128x128xf32>, vector<8x128xf32> -> vector<8x128xf32>
    %21 = arith.addf %20, %11 : vector<8x128xf32>
    %cst_15 = arith.constant 0.000000e+00 : f32
    %22 = vector.broadcast %cst_15 : f32 to vector<8x128xf32>
    %23 = arith.maximumf %21, %22 : vector<8x128xf32>
    %c0_16 = arith.constant 0 : index
    %c0_17 = arith.constant 0 : index
    %24 = vector.load %arg6[%c0_16, %c0_17] : memref<128x128xf32, #tpu.memory_space<vmem>>, vector<128x128xf32>
    %cst_18 = arith.constant dense<0.000000e+00> : vector<8x128xf32>
    %25 = tpu.matmul %23, %24, %cst_18 {dimension_numbers = #tpu.dot_dimension_numbers<[1], [0], [0], [1], [0, 0, 1, 1], [], []>} : vector<8x128xf32>, vector<128x128xf32>, vector<8x128xf32> -> vector<8x128xf32>
    %c0_19 = arith.constant 0 : index
    %c0_20 = arith.constant 0 : index
    %26 = vector.load %arg7[%c0_19, %c0_20] : memref<1x128xf32, #tpu.memory_space<vmem>>, vector<1x128xf32>
    %27 = vector.broadcast %26 : vector<1x128xf32> to vector<8x128xf32>
    %28 = arith.addf %25, %27 : vector<8x128xf32>
    %c0_21 = arith.constant 0 : index
    %c0_22 = arith.constant 0 : index
    %29 = vector.load %arg8[%c0_21, %c0_22] : memref<8x128xf32, #tpu.memory_space<vmem>>, vector<8x128xf32>
    tpu.vector_store %arg8[%c0_21, %c0_22], %28 {strides = array<i32>} : memref<8x128xf32, #tpu.memory_space<vmem>>, vector<8x128xf32>,
    return
  }
  func.func @transform_0(%arg0: i32) -> (i32, i32) {
    %c0_i32 = arith.constant 0 : i32
    %c0_i32_0 = arith.constant 0 : i32
    return %arg0, %c0_i32 : i32, i32
  }
  func.func @transform_1(%arg0: i32) -> (i32, i32) {
    %c0_i32 = arith.constant 0 : i32
    %c0_i32_0 = arith.constant 0 : i32
    %c0_i32_1 = arith.constant 0 : i32
    return %c0_i32, %c0_i32_0 : i32, i32
  }
  func.func @transform_2(%arg0: i32) -> (i32, i32) {
    %c0_i32 = arith.constant 0 : i32
    %c0_i32_0 = arith.constant 0 : i32
    %c0_i32_1 = arith.constant 0 : i32
    return %c0_i32, %c0_i32_0 : i32, i32
  }
  func.func @transform_3(%arg0: i32) -> (i32, i32) {
    %c0_i32 = arith.constant 0 : i32
    %c0_i32_0 = arith.constant 0 : i32
    %c0_i32_1 = arith.constant 0 : i32
    return %c0_i32, %c0_i32_0 : i32, i32
  }
  func.func @transform_4(%arg0: i32) -> (i32, i32) {
    %c0_i32 = arith.constant 0 : i32
    %c0_i32_0 = arith.constant 0 : i32
    %c0_i32_1 = arith.constant 0 : i32
    return %c0_i32, %c0_i32_0 : i32, i32
  }
  func.func @transform_5(%arg0: i32) -> (i32, i32) {
    %c0_i32 = arith.constant 0 : i32
    %c0_i32_0 = arith.constant 0 : i32
    %c0_i32_1 = arith.constant 0 : i32
    return %c0_i32, %c0_i32_0 : i32, i32
  }
  func.func @transform_6(%arg0: i32) -> (i32, i32) {
    %c0_i32 = arith.constant 0 : i32
    %c0_i32_0 = arith.constant 0 : i32
    %c0_i32_1 = arith.constant 0 : i32
    return %c0_i32, %c0_i32_0 : i32, i32
  }
  func.func @transform_7(%arg0: i32) -> (i32, i32) {
    %c0_i32 = arith.constant 0 : i32
    %c0_i32_0 = arith.constant 0 : i32
    return %arg0, %c0_i32 : i32, i32
  }
}

</mosaic_0001>

<bundles_post_ra>
// kernel: fwd.1
= control target key start
LH: loop header
LB: loop body
LE: loop exit
PB: predicated region body
PF: predicated region fallthrough
CT: control target
= control target key end

     0   :  { %12 = vsyncpa [#allocation3], 0  ;;  %s475_s0 = inlined_call_operand.hbm [shape: f32[8,32], index: 0, kind: input, shape index: {}]   ;;  %s476_s1 = inlined_call_operand.hbm [shape: f32[32,128], index: 1, kind: input, shape index: {}]   ;;  %s477_s2 = inlined_call_operand.vmem [shape: f32[1,128], index: 2, kind: input, shape index: {}]   ;;  %s478_s3 = inlined_call_operand.hbm [shape: f32[128,128], index: 3, kind: input, shape index: {}]   ;;  %s479_s4 = inlined_call_operand.vmem [shape: f32[1,128], index: 4, kind: input, shape index: {}]   ;;  %s480_s5 = inlined_call_operand.hbm [shape: f32[128,128], index: 5, kind: input, shape index: {}]   ;;  %s481_s6 = inlined_call_operand.vmem [shape: f32[1,128], index: 6, kind: input, shape index: {}]   ;;  %s482_s7 = inlined_call_operand.hbm [shape: f32[8,128], index: 7, kind: output, shape index: {}]  }
   0x1   :  { %13 = vsyncpa [#allocation6], 0 }
   0x2   :  { %14 = vsyncpa [#allocation9], 0  ;;  %s31_s26 = sshll.u32 %s476_s1, 4  ;;  %s32_s26 = int_to_ptr.hbm [resolvable:$true] %s31_s26 }
   0x3   :  { %15 = vsyncpa [#allocation4], 0  ;;  %s404_s27 = smov [#allocation5]   ;;  %s21_s8 = sshll.u32 %s475_s0, 4  ;;  %s22_s8 = int_to_ptr.hbm [resolvable:$true] %s21_s8 }
   0x4   :  { %s33_s28 = sshll.u32 %s404_s27, 4  ;;  %s405_s9 = smov 128   ;;  %s34_s28 = int_to_ptr.vmem [resolvable:$true] %s33_s28 }
   0x5   :  { %s406_s10 = smov 8   ;;  %s407_s11 = smov [#allocation2]  }
   0x6   :  { %39 = dma.hbm_to_vmem [thread:$0]  %s32_s26, 512, %s34_s28, [#allocation6], %s405_s9, %s405_s9, %s406_s10  }
   0x7   :  { %s23_s12 = sshll.u32 %s407_s11, 4  ;;  %s46_s15 = sshll.u32 %s478_s3, 4  ;;  %s24_s12 = int_to_ptr.vmem [resolvable:$true] %s23_s12  ;;  %s47_s15 = int_to_ptr.hbm [resolvable:$true] %s46_s15 }
   0x8   :  { %26 = dma.hbm_to_vmem [thread:$0]  %s22_s8, 128, %s24_s12, [#allocation3]  }
   0x9   :  { %s61_s17 = sshll.u32 %s480_s5, 4  ;;  %s408_s18 = smov [#allocation7]   ;;  %s62_s17 = int_to_ptr.hbm [resolvable:$true] %s61_s17 }
   0xa   :  { %s48_s19 = sshll.u32 %s408_s18, 4  ;;  %s409_s0 = smov [#allocation8]   ;;  %s49_s19 = int_to_ptr.vmem [resolvable:$true] %s48_s19 }
   0xb   :  { %54 = dma.hbm_to_vmem [thread:$0]  %s47_s15, 2048, %s49_s19, [#allocation6], %s405_s9, %s405_s9, %s406_s10  }
   0xc   :  { %s63_s20 = sshll.u32 %s409_s0, 4  ;;  %s64_s20 = int_to_ptr.vmem [resolvable:$true] %s63_s20 }
   0xd   :  { %69 = dma.hbm_to_vmem [thread:$0]  %s62_s17, 2048, %s64_s20, [#allocation9], %s405_s9, %s405_s9, %s406_s10  }
   0xe   :  { %396 = dma.done.wait [#allocation3], 128  }
   0xf   :  { %397 = vsyncadd [#allocation3], 4294967168 }
  0x10   :  { %398 = dma.done.wait [#allocation6], 2560  }
  0x11   :  { %399 = vsyncadd [#allocation6], 4294964736 }
  0x12   :  { %400 = dma.done.wait [#allocation9], 2048  }
  0x13   :  { %401 = vsyncadd [#allocation9], 4294965248  ;;  %v92_v0 = vld [vmem:[#allocation5 + $0x18] sm:$0xff]  ;;  %v91_v1 = vld [vmem:[#allocation5 + $0x10] sm:$0xff]  ;;  %vm97_vm0 = vcmask 261120   ;;  %s410_s23 = smov [#allocation10]  }
  0x14   :  { %113 = vmatpush.msra.mxu0 %v92_v0  ;;  %v137_v2 = vld [vmem:[#allocation7 + $0x78] sm:$0xff]  ;;  %v90_v3 = vld [vmem:[#allocation5 + $0x8] sm:$0xff]  ;;  %v136_v4 = vld [vmem:[#allocation7 + $0x70] sm:$0xff]  ;;  %s251_s24 = sshll.u32 %s410_s23, 4  ;;  %s253_s27 = sshll.u32 %s482_s7, 4  ;;  %s252_s24 = int_to_ptr.vmem [resolvable:$true] %s251_s24  ;;  %s254_s27 = int_to_ptr.hbm [resolvable:$true] %s253_s27 }
  0x15   :  { %142 = vmatpush.msra.mxu1 %v137_v2  ;;  %163 = vmatpush.msra.mxu2 %v137_v2  ;;  %v135_v5 = vld [vmem:[#allocation7 + $0x68] sm:$0xff]  ;;  %v89_v6 = vld [vmem:[#allocation5] sm:$0xff]  ;;  %v88_v7 = vld [vmem:[#allocation2] sm:$0xff] }
  0x16   :  { %114 = vmatpush.msra.mxu0 %v91_v1  ;;  %184 = vmatpush.msra.mxu3 %v137_v2  ;;  %v134_v8 = vld [vmem:[#allocation7 + $0x60] sm:$0xff]  ;;  %v133_v9 = vld [vmem:[#allocation7 + $0x58] sm:$0xff]  ;;  %v132_v10 = vld [vmem:[#allocation7 + $0x50] sm:$0xff] }
  0x17   :  { %143 = vmatpush.msra.mxu1 %v136_v4  ;;  %164 = vmatpush.msra.mxu2 %v136_v4  ;;  %v131_v11 = vld [vmem:[#allocation7 + $0x48] sm:$0xff]  ;;  %v130_v12 = vld [vmem:[#allocation7 + $0x40] sm:$0xff]  ;;  %v129_v13 = vld [vmem:[#allocation7 + $0x38] sm:$0xff] }
  0x18   :  { %115 = vmatpush.msra.mxu0 %v90_v3  ;;  %185 = vmatpush.msra.mxu3 %v136_v4  ;;  %v128_v14 = vld [vmem:[#allocation7 + $0x30] sm:$0xff]  ;;  %v127_v15 = vld [vmem:[#allocation7 + $0x28] sm:$0xff]  ;;  %v126_v16 = vld [vmem:[#allocation7 + $0x20] sm:$0xff] }
  0x19   :  { %144 = vmatpush.msra.mxu1 %v135_v5  ;;  %165 = vmatpush.msra.mxu2 %v135_v5  ;;  %v125_v17 = vld [vmem:[#allocation7 + $0x18] sm:$0xff]  ;;  %v124_v18 = vld [vmem:[#allocation7 + $0x10] sm:$0xff]  ;;  %v123_v19 = vld [vmem:[#allocation7 + $0x8] sm:$0xff] }
  0x1a   :  { %116 = vmatpush.msra.mxu0 %v89_v6  ;;  %186 = vmatpush.msra.mxu3 %v135_v5  ;;  %v122_v20 = vld [vmem:[#allocation7] sm:$0xff]  ;;  %v273_v21 = vld [vmem:[%s477_s2] ss:$0 sm:$0xff]  ;;  %v219_v30 = vld [vmem:[#allocation8 + $0x70] sm:$0xff] }
  0x1b   :  { %265 = vmatmul.msk.f32.vlgmr.msra.gmra.mxu0 %vm97_vm0, %v88_v7  ;;  %145 = vmatpush.msra.mxu1 %v134_v8  ;;  %v274_v25 = vld [vmem:[%s479_s4] ss:$0 sm:$0xff]  ;;  %v218_v31 = vld [vmem:[#allocation8 + $0x68] sm:$0xff]  ;;  %v217_v32 = vld [vmem:[#allocation8 + $0x60] sm:$0xff] }
  0x1c   :  { %166 = vmatpush.msra.mxu2 %v134_v8  ;;  %187 = vmatpush.msra.mxu3 %v134_v8  ;;  %v220_v29 = vld [vmem:[#allocation8 + $0x78] sm:$0xff]  ;;  %v215_v34 = vld [vmem:[#allocation8 + $0x50] sm:$0xff]  ;;  %v214_v35 = vld [vmem:[#allocation8 + $0x48] sm:$0xff] }
  0x1d   :  { %146 = vmatpush.msra.mxu1 %v133_v9  ;;  %225 = vmatpush.msrb.mxu0 %v220_v29  ;;  %v216_v33 = vld [vmem:[#allocation8 + $0x58] sm:$0xff]  ;;  %v213_v36 = vld [vmem:[#allocation8 + $0x40] sm:$0xff]  ;;  %v211_v38 = vld [vmem:[#allocation8 + $0x30] sm:$0xff] }
  0x1e   :  { %167 = vmatpush.msra.mxu2 %v133_v9  ;;  %188 = vmatpush.msra.mxu3 %v133_v9  ;;  %v212_v37 = vld [vmem:[#allocation8 + $0x38] sm:$0xff]  ;;  %v210_v39 = vld [vmem:[#allocation8 + $0x28] sm:$0xff]  ;;  %v209_v40 = vld [vmem:[#allocation8 + $0x20] sm:$0xff] }
  0x1f   :  { %147 = vmatpush.msra.mxu1 %v132_v10  ;;  %226 = vmatpush.msrb.mxu0 %v219_v30  ;;  %v208_v41 = vld [vmem:[#allocation8 + $0x18] sm:$0xff]  ;;  %v207_v45 = vld [vmem:[#allocation8 + $0x10] sm:$0xff]  ;;  %v206_v46 = vld [vmem:[#allocation8 + $0x8] sm:$0xff] }
  0x20   :  { %168 = vmatpush.msra.mxu2 %v132_v10  ;;  %189 = vmatpush.msra.mxu3 %v132_v10  ;;  %v205_v47 = vld [vmem:[#allocation8] sm:$0xff]  ;;  %v275_v51 = vld [vmem:[%s481_s6] ss:$0 sm:$0xff] }
  0x21   :  { %148 = vmatpush.msra.mxu1 %v131_v11  ;;  %227 = vmatpush.msrb.mxu0 %v218_v31 }
  0x22   :  { %169 = vmatpush.msra.mxu2 %v131_v11  ;;  %190 = vmatpush.msra.mxu3 %v131_v11 }
  0x23   :  { %149 = vmatpush.msra.mxu1 %v130_v12  ;;  %228 = vmatpush.msrb.mxu0 %v217_v32 }
  0x24   :  { %170 = vmatpush.msra.mxu2 %v130_v12  ;;  %191 = vmatpush.msra.mxu3 %v130_v12 }
  0x25   :  { %150 = vmatpush.msra.mxu1 %v129_v13  ;;  %229 = vmatpush.msrb.mxu0 %v216_v33 }
  0x26   :  { %171 = vmatpush.msra.mxu2 %v129_v13  ;;  %192 = vmatpush.msra.mxu3 %v129_v13 }
  0x27   :  { %151 = vmatpush.msra.mxu1 %v128_v14  ;;  %230 = vmatpush.msrb.mxu0 %v215_v34 }
  0x28   :  { %172 = vmatpush.msra.mxu2 %v128_v14  ;;  %193 = vmatpush.msra.mxu3 %v128_v14 }
  0x29   :  { %152 = vmatpush.msra.mxu1 %v127_v15  ;;  %231 = vmatpush.msrb.mxu0 %v214_v35 }
  0x2a   :  { %173 = vmatpush.msra.mxu2 %v127_v15  ;;  %194 = vmatpush.msra.mxu3 %v127_v15 }
  0x2b   :  { %153 = vmatpush.msra.mxu1 %v126_v16  ;;  %232 = vmatpush.msrb.mxu0 %v213_v36 }
  0x2c   :  { %174 = vmatpush.msra.mxu2 %v126_v16  ;;  %195 = vmatpush.msra.mxu3 %v126_v16 }
  0x2d   :  { %154 = vmatpush.msra.mxu1 %v125_v17  ;;  %233 = vmatpush.msrb.mxu0 %v212_v37 }
  0x2e   :  { %175 = vmatpush.msra.mxu2 %v125_v17  ;;  %196 = vmatpush.msra.mxu3 %v125_v17 }
  0x2f   :  { %155 = vmatpush.msra.mxu1 %v124_v18  ;;  %234 = vmatpush.msrb.mxu0 %v211_v38 }
  0x30   :  { %176 = vmatpush.msra.mxu2 %v124_v18  ;;  %197 = vmatpush.msra.mxu3 %v124_v18 }
  0x31   :  { %156 = vmatpush.msra.mxu1 %v123_v19  ;;  %235 = vmatpush.msrb.mxu0 %v210_v39 }
  0x32   :  { %177 = vmatpush.msra.mxu2 %v123_v19  ;;  %198 = vmatpush.msra.mxu3 %v123_v19 }
  0x33   :  { %157 = vmatpush.msra.mxu1 %v122_v20  ;;  %236 = vmatpush.msrb.mxu0 %v209_v40 }
  0x34   :  { %178 = vmatpush.msra.mxu2 %v122_v20  ;;  %199 = vmatpush.msra.mxu3 %v122_v20 }
  0x35   :  { %237 = vmatpush.msrb.mxu0 %v208_v41 }
  0x37   :  { %238 = vmatpush.msrb.mxu0 %v207_v45 }
  0x39   :  { %239 = vmatpush.msrb.mxu0 %v206_v46 }
  0x3b   :  { %240 = vmatpush.msrb.mxu0 %v205_v47 }
  0x98   :  { %v118_v22 = vpop.f32.mrf.mxu0 }
  0x99   :  { %v119_v23 = vadd.f32 %v273_v21, %v118_v22 }
  0x9b   :  { %v121_v24 = vmax.f32 %v119_v23, 0.0 }
  0x9d   :  { %158 = vmatmul.f32.vlgmr.msra.gmra.mxu1 %v121_v24 }
 0x11a   :  { %v159_v26 = vpop.f32.mrf.mxu1 }
 0x11b   :  { %v160_v27 = vadd.f32 %v274_v25, %v159_v26 }
 0x11d   :  { %v162_v28 = vmax.f32 %v160_v27, 0.0 }
 0x11f   :  { %179 = vmatmul.f32.vlgmr.msra.gmra.mxu2 %v162_v28 }
 0x1a2   :  { %v180_v42 = vpop.f32.mrf.mxu2 }
 0x1a3   :  { %v181_v43 = vadd.f32 %v274_v25, %v180_v42 }
 0x1a5   :  { %v183_v44 = vmax.f32 %v181_v43, 0.0 }
 0x1a7   :  { %200 = vmatmul.f32.vlgmr.msra.gmra.mxu3 %v183_v44 }
 0x22a   :  { %v201_v48 = vpop.f32.mrf.mxu3 }
 0x22b   :  { %v202_v49 = vadd.f32 %v274_v25, %v201_v48 }
 0x22d   :  { %v204_v50 = vmax.f32 %v202_v49, 0.0 }
 0x22f   :  { %241 = vmatmul.f32.vlgmr.msrb.gmra.mxu0 %v204_v50 }
 0x2ac   :  { %v242_v52 = vpop.f32.mrf.mxu0 }
 0x2ad   :  { %v243_v53 = vadd.f32 %v275_v51, %v242_v52 }
 0x2af   :  { %245 = vst [vmem:[#allocation10] sm:$0xff] %v243_v53 }
 0x2b0   :  { %256 = dma.vmem_to_hbm [thread:$0]  %s252_s24, 128, %s254_s27, [#allocation4]  }
 0x2b1   :  { %402 = dma.done.wait [#allocation4], 128  }
 0x2b2   :  { %403 = vsyncadd [#allocation4], 4294967168 }
 0x2b3   :  { %261 = vsyncpa [#allocation3], 1 }
 0x2b4   :  { %262 = vsyncpa [#allocation6], 1 }
 0x2b5   :  { %263 = vsyncpa [#allocation9], 1 }
 0x2b6   :  { %264 = vsyncpa [#allocation4], 1 }

</bundles_post_ra>
